<compile_context>
chip_gen: v6e
topology: v6e:2x2x1
jax: 0.10.0
libtpu: 0.0.40
codegen_flags: <defaults>
</compile_context>

<pallas_src>
import jax
import jax.numpy as jnp
from jax.experimental import pallas as pl
from jax.experimental.pallas import tpu as pltpu


def _mlp_kernel(x_ref, w1_ref, b1_ref, w2_ref, b2_ref, o_ref):
    # x_ref : (bm, 8)          -- 4 batch rows packed per sublane row
    # w1_ref: (8, 256)         -- block-diagonal replicated layer-1 weight
    # b1_ref: (1, 256)
    # w2_ref: (256, 4*h_dim)   -- block-diagonal replicated layer-2 weight
    # b2_ref: (1, 4*h_dim)
    # o_ref : (bm, 4*h_dim)

    # Layer 1 on the MXU: K=8 block-diagonal matmul, f32 accumulate.
    h = jnp.dot(x_ref[...], w1_ref[...], preferred_element_type=jnp.float32)
    h = jnp.maximum(h + b1_ref[...], 0.0)                 # (bm, 256)

    # Layer 2 on the MXU: K=256, N=4*h_dim (lane-dense 128 for h_dim=32).
    o = jnp.dot(h, w2_ref[...], preferred_element_type=jnp.float32)
    o = jnp.maximum(o + b2_ref[...], 0.0)
    o_ref[...] = o.astype(o_ref.dtype)


def _block_diag_replicate(w, p):
    """Place p copies of w on the diagonal of a (p*r, p*c) zero matrix."""
    r, c = w.shape
    out = jnp.zeros((p * r, p * c), w.dtype)
    for j in range(p):
        out = out.at[j * r:(j + 1) * r, j * c:(j + 1) * c].set(w)
    return out


def _vmem_budget_bytes(bm, p, in_dim, hidden, h_dim, out_itemsize):
    """Tile-derived VMEM budget (lane/sublane padded) + headroom."""
    lane, sub = 128, 8

    def tile(r, c, itemsize):
        r_pad = ((r + sub - 1) // sub) * sub
        c_pad = ((c + lane - 1) // lane) * lane
        return r_pad * c_pad * itemsize

    x_t = tile(bm, p * in_dim, 4)
    o_t = tile(bm, p * h_dim, out_itemsize)
    w1_t = tile(p * in_dim, p * hidden, 4)
    w2_t = tile(p * hidden, p * h_dim, 4)
    b_t = tile(1, p * hidden, 4) + tile(1, p * h_dim, 4)
    h_t = tile(bm, p * hidden, 4)
    # double-buffered operands + resident hidden + compiler temp headroom
    total = 2 * (x_t + o_t + w1_t + w2_t + b_t) + h_t + (8 << 20)
    return int(total)


def tty_cursor_encoder(x, w1, b1, w2, b2, *, block_rows=512,
                       out_dtype=jnp.float32):
    """Forward pass of TtyCursorEncoder.

    x:  (B, 2)       float-castable
    w1: (2, 64)      float32   (transposed PyTorch weight: in x out)
    b1: (64,)        float32
    w2: (64, h_dim)  float32   (transposed PyTorch weight: in x out)
    b2: (h_dim,)     float32
    returns (B, h_dim) in `out_dtype`.

    out_dtype=jnp.float32 matches the PyTorch module bit-for-bit-ish
    (f32 matmuls).  out_dtype=jnp.bfloat16 halves HBM output traffic
    (the dominant cost) at ~1e-2 relative tolerance vs the f32 reference.

    block_rows is the number of *packed* rows (4 batch rows each) per grid
    step; 512 packed rows = 2048 original rows per step.
    """
    x = x.astype(jnp.float32)
    w1 = w1.astype(jnp.float32)
    b1 = b1.astype(jnp.float32)
    w2 = w2.astype(jnp.float32)
    b2 = b2.astype(jnp.float32)

    B, in_dim = x.shape            # in_dim == 2
    hidden = w1.shape[1]           # 64
    h_dim = w2.shape[1]
    P = 4                          # batch rows folded into the lane axis
                                   # (keeps the output slab 128 lanes wide
                                   # for h_dim=32; fine on v5e's 128-wide MXU)

    # Pad batch to a multiple of P, pack P rows per lane-row (row-major).
    B_pad = ((B + P - 1) // P) * P
    if B_pad != B:
        x = jnp.pad(x, ((0, B_pad - B), (0, 0)))
    rows = B_pad // P
    xp = x.reshape(rows, P * in_dim)                      # (rows, 8)

    # Block-diagonal replicated weights so the packed layout is a plain MLP.
    w1_bd = _block_diag_replicate(w1, P)                  # (8, 256)
    w2_bd = _block_diag_replicate(w2, P)                  # (256, P*h_dim)
    b1_bd = jnp.tile(b1, P).reshape(1, P * hidden)        # (1, 256)
    b2_bd = jnp.tile(b2, P).reshape(1, P * h_dim)         # (1, P*h_dim)

    # Batch tile: full-extent single block for tiny problems, otherwise a
    # 512-packed-row tile (multiple of 8 sublanes) so the grid has several
    # steps -> DMA/compute overlap + megacore sharding on v7x.
    block_rows = max(8, (block_rows // 8) * 8)
    if rows <= block_rows:
        bm = rows
    else:
        bm = block_rows
    grid = (pl.cdiv(rows, bm),)

    vmem_bytes = _vmem_budget_bytes(bm, P, in_dim, hidden, h_dim,
                                    jnp.dtype(out_dtype).itemsize)

    out = pl.pallas_call(
        _mlp_kernel,
        out_shape=jax.ShapeDtypeStruct((rows, P * h_dim), out_dtype),
        grid=grid,
        in_specs=[
            pl.BlockSpec((bm, P * in_dim), lambda i: (i, 0)),          # x tile
            pl.BlockSpec((P * in_dim, P * hidden), lambda i: (0, 0)),  # w1_bd
            pl.BlockSpec((1, P * hidden), lambda i: (0, 0)),           # b1_bd
            pl.BlockSpec((P * hidden, P * h_dim), lambda i: (0, 0)),   # w2_bd
            pl.BlockSpec((1, P * h_dim), lambda i: (0, 0)),            # b2_bd
        ],
        out_specs=pl.BlockSpec((bm, P * h_dim), lambda i: (i, 0)),
        compiler_params=pltpu.CompilerParams(
            dimension_semantics=("parallel",),
            vmem_limit_bytes=vmem_bytes,
        ),
    )(xp, w1_bd, b1_bd, w2_bd, b2_bd)

    # (rows, P*h_dim) row-major == (B_pad, h_dim) row-major: reshape only.
    return out.reshape(B_pad, h_dim)[:B]


def _reference(x, w1, b1, w2, b2):
    h = jnp.maximum(x.astype(jnp.float32) @ w1 + b1, 0.0)
    return jnp.maximum(h @ w2 + b2, 0.0)


if __name__ == "__main__":
    key = jax.random.PRNGKey(0)
    k_x, k_w1, k_b1, k_w2, k_b2, k_x2, k_x3 = jax.random.split(key, 7)

    B = 8          # batch of cursor positions
    h_dim = 32     # module output dim
    hidden = 64    # fixed by the module definition

    # Deterministic synthetic weights (PyTorch Linear shapes, transposed).
    x = jax.random.uniform(k_x, (B, 2), jnp.float32, minval=0.0, maxval=80.0)
    w1 = jax.random.normal(k_w1, (2, hidden), jnp.float32) * 0.5
    b1 = jax.random.normal(k_b1, (hidden,), jnp.float32) * 0.1
    w2 = jax.random.normal(k_w2, (hidden, h_dim), jnp.float32) * 0.1
    b2 = jax.random.normal(k_b2, (h_dim,), jnp.float32) * 0.1

    # 1) Small batch, f32 output (exact semantics of the PyTorch module).
    out = jax.block_until_ready(tty_cursor_encoder(x, w1, b1, w2, b2))
    ref = _reference(x, w1, b1, w2, b2)
    assert out.shape == (B, h_dim)
    assert jnp.allclose(out, ref, atol=1e-4, rtol=1e-4), "mismatch vs reference"

    # 2) Batch not a multiple of the pack factor (padding path).
    B2 = 10
    x2 = jax.random.uniform(k_x2, (B2, 2), jnp.float32, minval=0.0, maxval=80.0)
    out2 = jax.block_until_ready(tty_cursor_encoder(x2, w1, b1, w2, b2))
    ref2 = _reference(x2, w1, b1, w2, b2)
    assert out2.shape == (B2, h_dim)
    assert jnp.allclose(out2, ref2, atol=1e-4, rtol=1e-4), "mismatch (padded batch)"

    # 3) Larger batch exercising the multi-step pipelined grid (+ tail block).
    B3 = 5000
    x3 = jax.random.uniform(k_x3, (B3, 2), jnp.float32, minval=0.0, maxval=80.0)
    out3 = jax.block_until_ready(tty_cursor_encoder(x3, w1, b1, w2, b2))
    ref3 = _reference(x3, w1, b1, w2, b2)
    assert out3.shape == (B3, h_dim)
    assert jnp.allclose(out3, ref3, atol=1e-4, rtol=1e-4), "mismatch (large batch)"

    # 4) bf16 output path (halves HBM write traffic; documented tolerance).
    out_bf16 = jax.block_until_ready(
        tty_cursor_encoder(x3, w1, b1, w2, b2, out_dtype=jnp.bfloat16))
    assert out_bf16.dtype == jnp.bfloat16
    assert jnp.allclose(out_bf16.astype(jnp.float32), ref3,
                        atol=1e-1, rtol=2e-2), "mismatch (bf16 output)"

    print("KERNEL_OK")
</pallas_src>

<mosaic_0001>
module attributes {stable_mosaic.version = 11 : i64} {
  func.func @_mlp_kernel(%arg0: i32, %arg1: memref<2x8xf32, #tpu.memory_space<vmem>>, %arg2: memref<8x256xf32, #tpu.memory_space<vmem>>, %arg3: memref<1x256xf32, #tpu.memory_space<vmem>>, %arg4: memref<256x128xf32, #tpu.memory_space<vmem>>, %arg5: memref<1x128xf32, #tpu.memory_space<vmem>>, %arg6: memref<2x128xf32, #tpu.memory_space<vmem>>) attributes {dimension_semantics = [#tpu.dimension_semantics<parallel>], iteration_bounds = array<i64: 1>, scalar_prefetch = 0 : i64, scratch_operands = 0 : i64, tpu.core_type = #tpu.core_type<tc>, window_params = [{transform_indices = @transform_0, window_bounds = array<i64: 2, 8>}, {pipeline_mode = #tpu.pipeline_mode<synchronous>, transform_indices = @transform_1, window_bounds = array<i64: 8, 256>}, {pipeline_mode = #tpu.pipeline_mode<synchronous>, transform_indices = @transform_2, window_bounds = array<i64: 1, 256>}, {pipeline_mode = #tpu.pipeline_mode<synchronous>, transform_indices = @transform_3, window_bounds = array<i64: 256, 128>}, {pipeline_mode = #tpu.pipeline_mode<synchronous>, transform_indices = @transform_4, window_bounds = array<i64: 1, 128>}, {transform_indices = @transform_5, window_bounds = array<i64: 2, 128>}]} {
    %c0 = arith.constant 0 : index
    %c0_0 = arith.constant 0 : index
    %0 = vector.load %arg1[%c0, %c0_0] : memref<2x8xf32, #tpu.memory_space<vmem>>, vector<2x8xf32>
    %c0_1 = arith.constant 0 : index
    %c0_2 = arith.constant 0 : index
    %1 = vector.load %arg2[%c0_1, %c0_2] : memref<8x256xf32, #tpu.memory_space<vmem>>, vector<8x256xf32>
    %cst = arith.constant dense<0.000000e+00> : vector<2x256xf32>
    %2 = tpu.matmul %0, %1, %cst {dimension_numbers = #tpu.dot_dimension_numbers<[1], [0], [0], [1], [0, 0, 1, 1], [], []>} : vector<2x8xf32>, vector<8x256xf32>, vector<2x256xf32> -> vector<2x256xf32>
    %c0_3 = arith.constant 0 : index
    %c0_4 = arith.constant 0 : index
    %3 = vector.load %arg3[%c0_3, %c0_4] : memref<1x256xf32, #tpu.memory_space<vmem>>, vector<1x256xf32>
    %4 = vector.broadcast %3 : vector<1x256xf32> to vector<2x256xf32>
    %5 = arith.addf %2, %4 : vector<2x256xf32>
    %cst_5 = arith.constant 0.000000e+00 : f32
    %6 = vector.broadcast %cst_5 : f32 to vector<2x256xf32>
    %7 = arith.maximumf %5, %6 : vector<2x256xf32>
    %c0_6 = arith.constant 0 : index
    %c0_7 = arith.constant 0 : index
    %8 = vector.load %arg4[%c0_6, %c0_7] : memref<256x128xf32, #tpu.memory_space<vmem>>, vector<256x128xf32>
    %cst_8 = arith.constant dense<0.000000e+00> : vector<2x128xf32>
    %9 = tpu.matmul %7, %8, %cst_8 {dimension_numbers = #tpu.dot_dimension_numbers<[1], [0], [0], [1], [0, 0, 1, 1], [], []>} : vector<2x256xf32>, vector<256x128xf32>, vector<2x128xf32> -> vector<2x128xf32>
    %c0_9 = arith.constant 0 : index
    %c0_10 = arith.constant 0 : index
    %10 = vector.load %arg5[%c0_9, %c0_10] : memref<1x128xf32, #tpu.memory_space<vmem>>, vector<1x128xf32>
    %11 = vector.broadcast %10 : vector<1x128xf32> to vector<2x128xf32>
    %12 = arith.addf %9, %11 : vector<2x128xf32>
    %cst_11 = arith.constant 0.000000e+00 : f32
    %13 = vector.broadcast %cst_11 : f32 to vector<2x128xf32>
    %14 = arith.maximumf %12, %13 : vector<2x128xf32>
    %c0_12 = arith.constant 0 : index
    %c0_13 = arith.constant 0 : index
    %15 = vector.load %arg6[%c0_12, %c0_13] : memref<2x128xf32, #tpu.memory_space<vmem>>, vector<2x128xf32>
    tpu.vector_store %arg6[%c0_12, %c0_13], %14 {strides = array<i32>} : memref<2x128xf32, #tpu.memory_space<vmem>>, vector<2x128xf32>,
    return
  }
  func.func @transform_0(%arg0: i32) -> (i32, i32) {
    %c0_i32 = arith.constant 0 : i32
    %c0_i32_0 = arith.constant 0 : i32
    return %arg0, %c0_i32 : i32, i32
  }
  func.func @transform_1(%arg0: i32) -> (i32, i32) {
    %c0_i32 = arith.constant 0 : i32
    %c0_i32_0 = arith.constant 0 : i32
    %c0_i32_1 = arith.constant 0 : i32
    return %c0_i32, %c0_i32_0 : i32, i32
  }
  func.func @transform_2(%arg0: i32) -> (i32, i32) {
    %c0_i32 = arith.constant 0 : i32
    %c0_i32_0 = arith.constant 0 : i32
    %c0_i32_1 = arith.constant 0 : i32
    return %c0_i32, %c0_i32_0 : i32, i32
  }
  func.func @transform_3(%arg0: i32) -> (i32, i32) {
    %c0_i32 = arith.constant 0 : i32
    %c0_i32_0 = arith.constant 0 : i32
    %c0_i32_1 = arith.constant 0 : i32
    return %c0_i32, %c0_i32_0 : i32, i32
  }
  func.func @transform_4(%arg0: i32) -> (i32, i32) {
    %c0_i32 = arith.constant 0 : i32
    %c0_i32_0 = arith.constant 0 : i32
    %c0_i32_1 = arith.constant 0 : i32
    return %c0_i32, %c0_i32_0 : i32, i32
  }
  func.func @transform_5(%arg0: i32) -> (i32, i32) {
    %c0_i32 = arith.constant 0 : i32
    %c0_i32_0 = arith.constant 0 : i32
    return %arg0, %c0_i32 : i32, i32
  }
}

</mosaic_0001>

<bundles_post_ra>
// kernel: tpu_custom_call.1
= control target key start
LH: loop header
LB: loop body
LE: loop exit
PB: predicated region body
PF: predicated region fallthrough
CT: control target
= control target key end

     0   :  { %10 = vsyncpa [#allocation3], 0  ;;  %s462_s0 = inlined_call_operand.hbm [shape: f32[2,8], index: 0, kind: input, shape index: {}]   ;;  %s463_s1 = inlined_call_operand.hbm [shape: f32[8,256], index: 1, kind: input, shape index: {}]   ;;  %s464_s2 = inlined_call_operand.vmem [shape: f32[1,256], index: 2, kind: input, shape index: {}]   ;;  %s465_s3 = inlined_call_operand.hbm [shape: f32[256,128], index: 3, kind: input, shape index: {}]   ;;  %s466_s4 = inlined_call_operand.vmem [shape: f32[1,128], index: 4, kind: input, shape index: {}]   ;;  %s467_s5 = inlined_call_operand.hbm [shape: f32[2,128], index: 5, kind: output, shape index: {}]  }
   0x1   :  { %11 = vsyncpa [#allocation6], 0 }
   0x2   :  { %12 = vsyncpa [#allocation4], 0  ;;  %s407_s18 = smov [#allocation5]   ;;  %s408_s20 = smov [#allocation2]  }
   0x3   :  { %s29_s19 = sshll.u32 %s407_s18, 4  ;;  %s19_s21 = sshll.u32 %s408_s20, 4  ;;  %s30_s19 = int_to_ptr.vmem [resolvable:$true] %s29_s19  ;;  %s20_s21 = int_to_ptr.vmem [resolvable:$true] %s19_s21 }
   0x4   :  { %s329_s22 = scalar_lea.vmem %s30_s19, 256  ;;  %p334_p1 = scmp.lt.s32.totalorder %s30_s19, %s30_s19 }
   0x5   :  { %p330_p0 = scmp.ne.s32.totalorder %s30_s19, %s329_s22  ;;  %p335_p2 = scmp.lt.s32.totalorder %s329_s22, %s329_s22 }
   0x7   :  { %p336_p3 = por %p335_p2, %p334_p1 }
   0x9   :  { %p337_p4 = pnand %p336_p3, %p330_p0 }
   0xb   :  { %340 = shalt.err (!%p337_p4)
}
   0xc   :  { %32 = dma.hbm_to_vmem [thread:$0]  %s463_s1, 256, %s30_s19, [#allocation6]  }
   0xd   :  { %s349_s25 = scalar_lea.vmem %s20_s21, 32  ;;  %p354_p6 = scmp.lt.s32.totalorder %s20_s21, %s20_s21 }
   0xe   :  { %p350_p5 = scmp.ne.s32.totalorder %s20_s21, %s349_s25  ;;  %p355_p7 = scmp.lt.s32.totalorder %s349_s25, %s349_s25 }
  0x10   :  { %p356_p8 = por %p355_p7, %p354_p6 }
  0x12   :  { %p357_p9 = pnand %p356_p8, %p350_p5 }
  0x14   :  { %360 = shalt.err (!%p357_p9)
}
  0x15   :  { %22 = dma.hbm_to_vmem [thread:$0]  %s462_s0, 32, %s20_s21, [#allocation3]  }
  0x16   :  { %s409_s28 = smov [#allocation7]  }
  0x17   :  { %s40_s29 = sshll.u32 %s409_s28, 4  ;;  %s41_s29 = int_to_ptr.vmem [resolvable:$true] %s40_s29 }
  0x18   :  { %s369_s30 = scalar_lea.vmem %s41_s29, 4096  ;;  %p374_p11 = scmp.lt.s32.totalorder %s41_s29, %s41_s29 }
  0x19   :  { %p370_p10 = scmp.ne.s32.totalorder %s41_s29, %s369_s30  ;;  %p375_p12 = scmp.lt.s32.totalorder %s369_s30, %s369_s30 }
  0x1b   :  { %p376_p13 = por %p375_p12, %p374_p11 }
  0x1d   :  { %p377_p0 = pnand %p376_p13, %p370_p10 }
  0x1f   :  { %380 = shalt.err (!%p377_p0)
}
  0x20   :  { %s410_s1 = smov 128   ;;  %s411_s6 = smov 8  }
  0x21   :  { %46 = dma.hbm_to_vmem [thread:$0]  %s465_s3, 4096, %s41_s29, [#allocation6], %s410_s1, %s410_s1, %s411_s6  }
  0x22   :  { %401 = dma.done.wait [#allocation3], 32  }
  0x23   :  { %402 = vsyncadd [#allocation3], 4294967264 }
  0x24   :  { %403 = dma.done.wait [#allocation6], 4352  }
  0x25   :  { %404 = vsyncadd [#allocation6], 4294962944  ;;  %v412_v0 = vmov 0.0   ;;  %v60_v1 = vld [vmem:[#allocation5 + $0x8] sm:$0xff]  ;;  %v59_v2 = vld [vmem:[#allocation5] sm:$0xff]  ;;  %vm73_vm0 = vcmask 64512   ;;  %v63_v36 = vlaneseq }
  0x26   :  { %141 = vmatprep.mubr.f32.mxu0 %v412_v0  ;;  %v58_v3 = vld [vmem:[#allocation2] sm:$0x3]  ;;  %107 = vmatprep.subr.mxu0 %v60_v1  ;;  %v181_v4 = vld [vmem:[#allocation7 + $0xf8] sm:$0xff]  ;;  %v180_v6 = vld [vmem:[#allocation7 + $0xf0] sm:$0xff]  ;;  %s413_s11 = smov [#allocation8]  }
  0x27   :  { %v165_v5 = vld [vmem:[#allocation7 + $0x78] sm:$0xff]  ;;  %108 = vmatpush1.msra.mxu0 %v59_v2  ;;  %279 = vmatprep.subr.mxu1 %v181_v4  ;;  %v164_v7 = vld [vmem:[#allocation7 + $0x70] sm:$0xff]  ;;  %v179_v8 = vld [vmem:[#allocation7 + $0xe8] sm:$0xff]  ;;  %v64_v37 = vshrl.u32 %v63_v36, 7 }
  0x28   :  { %277 = vmatmul.mubr.msk.f32.vlgmr.msra.gmra.mxu0 %vm73_vm0, %v58_v3  ;;  %280 = vmatpush3.msra.mxu1 %v165_v5  ;;  %v163_v9 = vld [vmem:[#allocation7 + $0x68] sm:$0xff]  ;;  %v178_v10 = vld [vmem:[#allocation7 + $0xe0] sm:$0xff]  ;;  %v177_v12 = vld [vmem:[#allocation7 + $0xd8] sm:$0xff] }
  0x29   :  { %281 = vmatprep.subr.mxu1 %v180_v6  ;;  %v162_v11 = vld [vmem:[#allocation7 + $0x60] sm:$0xff]  ;;  %v161_v13 = vld [vmem:[#allocation7 + $0x58] sm:$0xff]  ;;  %v176_v14 = vld [vmem:[#allocation7 + $0xd0] sm:$0xff]  ;;  %v65_v38 = vsub.s32 0, %v64_v37  ;;  %v69_v40 = vsub.s32 1, %v64_v37 }
  0x2a   :  { %282 = vmatpush3.msra.mxu1 %v164_v7  ;;  %v160_v15 = vld [vmem:[#allocation7 + $0x50] sm:$0xff]  ;;  %v175_v16 = vld [vmem:[#allocation7 + $0xc8] sm:$0xff]  ;;  %v174_v18 = vld [vmem:[#allocation7 + $0xc0] sm:$0xff] }
  0x2b   :  { %283 = vmatprep.subr.mxu1 %v179_v8  ;;  %v159_v17 = vld [vmem:[#allocation7 + $0x48] sm:$0xff]  ;;  %v158_v19 = vld [vmem:[#allocation7 + $0x40] sm:$0xff]  ;;  %v173_v20 = vld [vmem:[#allocation7 + $0xb8] sm:$0xff] }
  0x2c   :  { %284 = vmatpush3.msra.mxu1 %v163_v9  ;;  %v157_v21 = vld [vmem:[#allocation7 + $0x38] sm:$0xff]  ;;  %v172_v22 = vld [vmem:[#allocation7 + $0xb0] sm:$0xff]  ;;  %v171_v24 = vld [vmem:[#allocation7 + $0xa8] sm:$0xff] }
  0x2d   :  { %285 = vmatprep.subr.mxu1 %v178_v10  ;;  %v156_v23 = vld [vmem:[#allocation7 + $0x30] sm:$0xff]  ;;  %v155_v25 = vld [vmem:[#allocation7 + $0x28] sm:$0xff]  ;;  %v170_v26 = vld [vmem:[#allocation7 + $0xa0] sm:$0xff] }
  0x2e   :  { %286 = vmatpush3.msra.mxu1 %v162_v11  ;;  %v154_v27 = vld [vmem:[#allocation7 + $0x20] sm:$0xff]  ;;  %v169_v28 = vld [vmem:[#allocation7 + $0x98] sm:$0xff]  ;;  %v168_v30 = vld [vmem:[#allocation7 + $0x90] sm:$0xff] }
  0x2f   :  { %287 = vmatprep.subr.mxu1 %v177_v12  ;;  %v153_v29 = vld [vmem:[#allocation7 + $0x18] sm:$0xff]  ;;  %v152_v31 = vld [vmem:[#allocation7 + $0x10] sm:$0xff]  ;;  %v167_v32 = vld [vmem:[#allocation7 + $0x88] sm:$0xff] }
  0x30   :  { %288 = vmatpush3.msra.mxu1 %v161_v13  ;;  %v151_v33 = vld [vmem:[#allocation7 + $0x8] sm:$0xff]  ;;  %v166_v34 = vld [vmem:[#allocation7 + $0x80] sm:$0xff] }
  0x31   :  { %289 = vmatprep.subr.mxu1 %v176_v14  ;;  %v150_v35 = vld [vmem:[#allocation7] sm:$0xff]  ;;  %v61_v39 = vld [vmem:[%s464_s2] sm:$0x3]  ;;  %s267_s2 = sshll.u32 %s413_s11, 4  ;;  %s268_s2 = int_to_ptr.vmem [resolvable:$true] %s267_s2 }
  0x32   :  { %290 = vmatpush3.msra.mxu1 %v160_v15  ;;  %v66_v41 = vrot.slane %v61_v39, %v65_v38  ;;  %v70_v42 = vrot.slane %v61_v39, %v69_v40  ;;  %v278_v50 = vld [vmem:[%s466_s4] ss:$0 sm:$0xff]  ;;  %s381_s12 = scalar_lea.vmem %s268_s2, 32  ;;  %p386_p2 = scmp.lt.s32.totalorder %s268_s2, %s268_s2 }
  0x33   :  { %291 = vmatprep.subr.mxu1 %v175_v16  ;;  %p382_p1 = scmp.ne.s32.totalorder %s268_s2, %s381_s12  ;;  %p387_p3 = scmp.lt.s32.totalorder %s381_s12, %s381_s12 }
  0x34   :  { %292 = vmatpush3.msra.mxu1 %v159_v17 }
  0x35   :  { %293 = vmatprep.subr.mxu1 %v174_v18  ;;  %p388_p4 = por %p387_p3, %p386_p2 }
  0x36   :  { %294 = vmatpush3.msra.mxu1 %v158_v19 }
  0x37   :  { %295 = vmatprep.subr.mxu1 %v173_v20  ;;  %p389_p5 = pnand %p388_p4, %p382_p1 }
  0x38   :  { %296 = vmatpush3.msra.mxu1 %v157_v21 }
  0x39   :  { %297 = vmatprep.subr.mxu1 %v172_v22 }
  0x3a   :  { %298 = vmatpush3.msra.mxu1 %v156_v23 }
  0x3b   :  { %299 = vmatprep.subr.mxu1 %v171_v24 }
  0x3c   :  { %300 = vmatpush3.msra.mxu1 %v155_v25 }
  0x3d   :  { %301 = vmatprep.subr.mxu1 %v170_v26 }
  0x3e   :  { %302 = vmatpush3.msra.mxu1 %v154_v27 }
  0x3f   :  { %303 = vmatprep.subr.mxu1 %v169_v28 }
  0x40   :  { %304 = vmatpush3.msra.mxu1 %v153_v29 }
  0x41   :  { %305 = vmatprep.subr.mxu1 %v168_v30 }
  0x42   :  { %306 = vmatpush3.msra.mxu1 %v152_v31 }
  0x43   :  { %307 = vmatprep.subr.mxu1 %v167_v32 }
  0x44   :  { %308 = vmatpush3.msra.mxu1 %v151_v33 }
  0x45   :  { %309 = vmatprep.subr.mxu1 %v166_v34 }
  0x46   :  { %310 = vmatpush3.msra.mxu1 %v150_v35 }
  0xe8   :  { %v143_v43 = vpop.f32.mrf.mxu0 }
  0xe9   :  { %v144_v44 = vadd.f32 %v143_v43, %v66_v41 }
  0xea   :  { %v145_v45 = vpop.f32.mrf.mxu0 }
  0xeb   :  { %v146_v46 = vadd.f32 %v145_v45, %v70_v42  ;;  %v148_v48 = vmax.f32 %v144_v44, 0.0 }
  0xed   :  { %v149_v47 = vmax.f32 %v146_v46, 0.0 }
  0xef   :  { %253 = vmatprep.mubr.f32.mxu1 %v149_v47 }
  0xf0   :  { %254 = vmatmul.mubr.f32.vlgmr.msra.gmra.mxu1 %v148_v48 }
 0x1b0   :  { %v311_v49 = vpop.f32.mrf.mxu1 }
 0x1b2   :  { %v312_v51 = vpop.f32.mrf.mxu1 }
 0x1b3   :  { %v313_v52 = vadd.f32 %v312_v51, %v311_v49 }
 0x1b5   :  { %v256_v53 = vadd.f32 %v313_v52, %v278_v50 }
 0x1b7   :  { %v259_v54 = vmax.f32 %v256_v53, 0.0 }
 0x1b9   :  { %260 = vst [vmem:[#allocation8] sm:$0x3] %v259_v54 }
 0x1ba   :  { %392 = shalt.err (!%p389_p5)
}
 0x1bb   :  { %270 = dma.vmem_to_hbm [thread:$0]  %s268_s2, 32, %s467_s5, [#allocation4]  }
 0x1bc   :  { %405 = dma.done.wait [#allocation4], 32  }
 0x1bd   :  { %406 = vsyncadd [#allocation4], 4294967264 }
 0x1be   :  { %274 = vsyncpa [#allocation3], 1 }
 0x1bf   :  { %275 = vsyncpa [#allocation6], 1 }
 0x1c0   :  { %276 = vsyncpa [#allocation4], 1 }

</bundles_post_ra>
